<compile_context>
chip_gen: v7x
topology: tpu7x:2x2x1
jax: 0.10.0
libtpu: 0.0.40
codegen_flags: <defaults>
</compile_context>

<pallas_src>
import functools

import jax
import jax.numpy as jnp
import numpy as np
from jax.experimental import pallas as pl
from jax.experimental.pallas import tpu as pltpu


def _round_up(x, m):
    return ((x + m - 1) // m) * m


def _infer_kernel(n_valid, tile_rows, x_ref, y_ref, probs_ref, preds_ref, hits_ref):
    """One row-tile of the Trainer evaluation path.

    x_ref     : (TR, C)     float32  logits tile
    y_ref     : (N_pad, 1)  int32    labels, resident in VMEM across the grid
    probs_ref : (TR, C)     float32  softmax probabilities (predict_proba)
    preds_ref : (TR, 1)     int32    argmax class id       (predict / y_hat)
    hits_ref  : (TR, 1)     int32    1 if prediction correct else 0 (evaluate),
                                     0 on padded rows; summed in the wrapper.
    """
    i = pl.program_id(0)
    x = x_ref[...]                                               # (TR, C) f32

    # --- softmax over class axis (numerically stable) -----------------------
    m = jnp.max(x, axis=1, keepdims=True)                        # (TR, 1)
    e = jnp.exp(x - m)                                           # EUP
    denom = jnp.sum(e, axis=1, keepdims=True)                    # XLU reduce
    probs_ref[...] = e * pl.reciprocal(denom, approx=True)       # EUP vrcp

    # --- argmax over class axis (first-occurrence tie-break, like jnp.argmax)
    c = x.shape[1]
    col = jax.lax.broadcasted_iota(jnp.int32, x.shape, 1)        # (TR, C)
    cand = jnp.where(x == m, col, jnp.int32(c))
    preds = jnp.min(cand, axis=1, keepdims=True).astype(jnp.int32)  # (TR, 1)
    preds_ref[...] = preds

    # --- per-row correctness (labels sliced out of the resident VMEM copy) --
    start = pl.multiple_of(i * tile_rows, tile_rows)
    y = y_ref[pl.ds(start, tile_rows), :]                        # (TR, 1)
    row = start + jax.lax.broadcasted_iota(jnp.int32, (tile_rows, 1), 0)
    valid = row < n_valid                                        # mask padded rows
    hits_ref[...] = jnp.where(valid & (preds == y),
                              jnp.int32(1), jnp.int32(0))


@functools.partial(jax.jit, static_argnames=("tile_rows",))
def trainer_eval_step(logits, labels, *, tile_rows=None):
    """Pallas-backed equivalent of Trainer.predict_proba / predict / evaluate
    (per-batch pieces): returns (softmax probs, argmax preds, correct count)."""
    logits = jnp.asarray(logits, jnp.float32)
    labels = jnp.asarray(labels, jnp.int32).reshape(-1, 1)
    n, c = logits.shape

    # --- tile sizing: big row tiles, bounded by a VMEM budget ---------------
    if tile_rows is None:
        # ~8 MiB for the double-buffered f32 logits-in + probs-out tiles
        # (2 in + 2 out buffers, c * 4 bytes per row each); well under the
        # 32 MiB scoped VMEM limit requested below on every TPU generation.
        budget_rows = (8 * 1024 * 1024) // (4 * c * 4)
        tile_rows = int(max(8, min(1024, budget_rows)))
    tile_rows = max(8, (int(tile_rows) // 8) * 8)
    tile_rows = min(tile_rows, _round_up(n, 8))      # don't tile past the data

    n_pad = _round_up(n, tile_rows)
    if n_pad != n:
        logits = jnp.pad(logits, ((0, n_pad - n), (0, 0)))
        labels = jnp.pad(labels, ((0, n_pad - n), (0, 0)))

    grid = (n_pad // tile_rows,)
    kernel = functools.partial(_infer_kernel, n, tile_rows)

    probs, preds, hits = pl.pallas_call(
        kernel,
        out_shape=(
            jax.ShapeDtypeStruct((n_pad, c), jnp.float32),
            jax.ShapeDtypeStruct((n_pad, 1), jnp.int32),
            jax.ShapeDtypeStruct((n_pad, 1), jnp.int32),
        ),
        grid=grid,
        in_specs=[
            pl.BlockSpec((tile_rows, c), lambda i: (i, 0)),
            pl.BlockSpec((n_pad, 1), lambda i: (0, 0)),     # labels resident in VMEM
        ],
        out_specs=(
            pl.BlockSpec((tile_rows, c), lambda i: (i, 0)),
            pl.BlockSpec((tile_rows, 1), lambda i: (i, 0)),
            pl.BlockSpec((tile_rows, 1), lambda i: (i, 0)),
        ),
        compiler_params=pltpu.CompilerParams(
            # No cross-step accumulator any more -> rows shard across both
            # TensorCores on v7x; neutral (1 TC) on v5e/v6e.
            dimension_semantics=("parallel",),
            vmem_limit_bytes=32 * 1024 * 1024,
        ),
    )(logits, labels)

    correct = jnp.sum(hits)            # padded rows are 0 by in-kernel masking
    return probs[:n], preds[:n, 0], correct


if __name__ == "__main__":
    key = jax.random.PRNGKey(0)
    k_x, k_y = jax.random.split(key)

    N, C = 200, 128  # small synthetic batch of logits over C classes
    logits = jax.random.normal(k_x, (N, C), dtype=jnp.float32)
    labels = jax.random.randint(k_y, (N,), 0, C, dtype=jnp.int32)

    # Reference (mirrors the PyTorch semantics).
    ref_probs = jax.nn.softmax(logits, axis=1)
    ref_preds = jnp.argmax(logits, axis=1).astype(jnp.int32)
    ref_correct = jnp.sum((ref_preds == labels).astype(jnp.int32))

    # Run twice: auto-sized tile (single grid step) and a small explicit tile
    # that exercises padding + the multi-step "parallel" grid.
    for tr in (None, 128):
        probs, preds, correct = trainer_eval_step(logits, labels, tile_rows=tr)
        jax.block_until_ready((probs, preds, correct))
        np.testing.assert_allclose(np.asarray(probs), np.asarray(ref_probs),
                                   rtol=1e-3, atol=1e-3)  # approx=True reciprocal
        np.testing.assert_array_equal(np.asarray(preds), np.asarray(ref_preds))
        np.testing.assert_array_equal(np.asarray(correct), np.asarray(ref_correct))

    print("KERNEL_OK")
</pallas_src>

<mosaic_0001>
module attributes {stable_mosaic.version = 11 : i64} {
  func.func @_infer_kernel(%arg0: i32, %arg1: memref<200x128xf32, #tpu.memory_space<vmem>>, %arg2: memref<200x1xi32, #tpu.memory_space<vmem>>, %arg3: memref<200x128xf32, #tpu.memory_space<vmem>>, %arg4: memref<200x1xi32, #tpu.memory_space<vmem>>, %arg5: memref<200x1xi32, #tpu.memory_space<vmem>>) attributes {dimension_semantics = [#tpu.dimension_semantics<parallel>], iteration_bounds = array<i64: 1>, scalar_prefetch = 0 : i64, scratch_operands = 0 : i64, tpu.core_type = #tpu.core_type<tc>, window_params = [{transform_indices = @transform_0, window_bounds = array<i64: 200, 128>}, {pipeline_mode = #tpu.pipeline_mode<synchronous>, transform_indices = @transform_1, window_bounds = array<i64: 200, 1>}, {transform_indices = @transform_2, window_bounds = array<i64: 200, 128>}, {transform_indices = @transform_3, window_bounds = array<i64: 200, 1>}, {transform_indices = @transform_4, window_bounds = array<i64: 200, 1>}]} {
    %c0 = arith.constant 0 : index
    %c0_0 = arith.constant 0 : index
    %0 = vector.load %arg1[%c0, %c0_0] : memref<200x128xf32, #tpu.memory_space<vmem>>, vector<200x128xf32>
    %cst = arith.constant dense<0xFF800000> : vector<200xf32>
    %1 = vector.multi_reduction <maximumf>, %0, %cst [1] : vector<200x128xf32> to vector<200xf32>
    %2 = vector.shape_cast %1 : vector<200xf32> to vector<200x1xf32>
    %3 = vector.broadcast %2 : vector<200x1xf32> to vector<200x128xf32>
    %4 = arith.subf %0, %3 : vector<200x128xf32>
    %5 = math.exp %4 : vector<200x128xf32>
    %cst_1 = arith.constant dense<0.000000e+00> : vector<200xf32>
    %6 = vector.multi_reduction <add>, %5, %cst_1 [1] : vector<200x128xf32> to vector<200xf32>
    %7 = vector.shape_cast %6 : vector<200xf32> to vector<200x1xf32>
    %8 = tpu.reciprocal %7 {approx = true} : vector<200x1xf32> -> vector<200x1xf32>
    %9 = vector.broadcast %8 : vector<200x1xf32> to vector<200x128xf32>
    %10 = arith.mulf %5, %9 : vector<200x128xf32>
    %c0_2 = arith.constant 0 : index
    %c0_3 = arith.constant 0 : index
    %11 = vector.load %arg3[%c0_2, %c0_3] : memref<200x128xf32, #tpu.memory_space<vmem>>, vector<200x128xf32>
    tpu.vector_store %arg3[%c0_2, %c0_3], %10 {strides = array<i32>} : memref<200x128xf32, #tpu.memory_space<vmem>>, vector<200x128xf32>,
    %12 = tpu.iota {dimensions = array<i32: 1>} : vector<200x128xi32>
    %13 = vector.broadcast %2 : vector<200x1xf32> to vector<200x128xf32>
    %14 = arith.cmpf oeq, %0, %13 : vector<200x128xf32>
    %c128_i32 = arith.constant 128 : i32
    %15 = vector.broadcast %c128_i32 : i32 to vector<200x128xi32>
    %16 = arith.select %14, %12, %15 : vector<200x128xi1>, vector<200x128xi32>
    %cst_4 = arith.constant dense<2147483647> : vector<200xi32>
    %17 = vector.multi_reduction <minsi>, %16, %cst_4 [1] : vector<200x128xi32> to vector<200xi32>
    %18 = vector.shape_cast %17 : vector<200xi32> to vector<200x1xi32>
    %c0_5 = arith.constant 0 : index
    %c0_6 = arith.constant 0 : index
    %19 = vector.load %arg4[%c0_5, %c0_6] : memref<200x1xi32, #tpu.memory_space<vmem>>, vector<200x1xi32>
    tpu.vector_store %arg4[%c0_5, %c0_6], %18 {strides = array<i32>} : memref<200x1xi32, #tpu.memory_space<vmem>>, vector<200x1xi32>,
    %c200_i32 = arith.constant 200 : i32
    %20 = arith.muli %arg0, %c200_i32 : i32
    %21 = tpu.assume_multiple %20, 200 : i32
    %22 = arith.index_cast %21 : i32 to index
    %c0_7 = arith.constant 0 : index
    %23 = vector.load %arg2[%22, %c0_7] : memref<200x1xi32, #tpu.memory_space<vmem>>, vector<200x1xi32>
    %24 = tpu.iota {dimensions = array<i32: 0>} : vector<200x1xi32>
    %25 = vector.broadcast %21 : i32 to vector<200x1xi32>
    %26 = arith.addi %25, %24 : vector<200x1xi32>
    %c200_i32_8 = arith.constant 200 : i32
    %27 = vector.broadcast %c200_i32_8 : i32 to vector<200x1xi32>
    %28 = arith.cmpi slt, %26, %27 : vector<200x1xi32>
    %29 = arith.cmpi eq, %18, %23 : vector<200x1xi32>
    %30 = arith.andi %28, %29 : vector<200x1xi1>
    %c1_i32 = arith.constant 1 : i32
    %c0_i32 = arith.constant 0 : i32
    %31 = vector.broadcast %c1_i32 : i32 to vector<200x1xi32>
    %32 = vector.broadcast %c0_i32 : i32 to vector<200x1xi32>
    %33 = arith.select %30, %31, %32 : vector<200x1xi1>, vector<200x1xi32>
    %c0_9 = arith.constant 0 : index
    %c0_10 = arith.constant 0 : index
    %34 = vector.load %arg5[%c0_9, %c0_10] : memref<200x1xi32, #tpu.memory_space<vmem>>, vector<200x1xi32>
    tpu.vector_store %arg5[%c0_9, %c0_10], %33 {strides = array<i32>} : memref<200x1xi32, #tpu.memory_space<vmem>>, vector<200x1xi32>,
    return
  }
  func.func @transform_0(%arg0: i32) -> (i32, i32) {
    %c0_i32 = arith.constant 0 : i32
    %c0_i32_0 = arith.constant 0 : i32
    return %arg0, %c0_i32 : i32, i32
  }
  func.func @transform_1(%arg0: i32) -> (i32, i32) {
    %c0_i32 = arith.constant 0 : i32
    %c0_i32_0 = arith.constant 0 : i32
    %c0_i32_1 = arith.constant 0 : i32
    return %c0_i32, %c0_i32_0 : i32, i32
  }
  func.func @transform_2(%arg0: i32) -> (i32, i32) {
    %c0_i32 = arith.constant 0 : i32
    %c0_i32_0 = arith.constant 0 : i32
    return %arg0, %c0_i32 : i32, i32
  }
  func.func @transform_3(%arg0: i32) -> (i32, i32) {
    %c0_i32 = arith.constant 0 : i32
    %c0_i32_0 = arith.constant 0 : i32
    return %arg0, %c0_i32 : i32, i32
  }
  func.func @transform_4(%arg0: i32) -> (i32, i32) {
    %c0_i32 = arith.constant 0 : i32
    %c0_i32_0 = arith.constant 0 : i32
    return %arg0, %c0_i32 : i32, i32
  }
}

</mosaic_0001>

<bundles_post_ra>
// kernel: trainer_eval_step.1
= control target key start
LH: loop header
LB: loop body
LE: loop exit
PB: predicated region body
PF: predicated region fallthrough
CT: control target
= control target key end

     0   :  { %s2142_s0 = inlined_call_operand.vmem [shape: f32[200,128], index: 0, kind: input, shape index: {}]   ;;  %s2143_s1 = inlined_call_operand.vmem [shape: s32[200,1], index: 1, kind: input, shape index: {}]   ;;  %s2144_s2 = inlined_call_operand.hbm [shape: f32[200,128], index: 2, kind: output, shape index: {0}]   ;;  %s2145_s3 = inlined_call_operand.vmem [shape: s32[200,1], index: 3, kind: output, shape index: {1}]   ;;  %s2146_s4 = inlined_call_operand.vmem [shape: s32[200,1], index: 4, kind: output, shape index: {2}]  }
   0x1   :  { %v1106_v0 = vld [vmem:[%s2142_s0] sm:$0xff]  ;;  %v1111_v1 = vld [vmem:[%s2142_s0 + $0x10] sm:$0xff]  ;;  %v1118_v2 = vld [vmem:[%s2142_s0 + $0x8] sm:$0xff] }
   0x2   :  { %40 = vmax.xlane.f32.xlu0 %v1106_v0  ;;  %44 = vmax.xlane.f32.xlu1 %v1111_v1  ;;  %v1123_v3 = vld [vmem:[%s2142_s0 + $0x18] sm:$0xff]  ;;  %v1130_v4 = vld [vmem:[%s2142_s0 + $0x20] sm:$0xff]  ;;  %v1135_v5 = vld [vmem:[%s2142_s0 + $0x28] sm:$0xff] }
   0x6   :  { %42 = vmax.xlane.f32.xlu0 %v1118_v2  ;;  %46 = vmax.xlane.f32.xlu1 %v1123_v3 }
   0x7   :  { %10 = vsyncpa [#allocation3], 0  ;;  %v1142_v6 = vld [vmem:[%s2142_s0 + $0x30] sm:$0xff]  ;;  %v1147_v7 = vld [vmem:[%s2142_s0 + $0x38] sm:$0xff]  ;;  %v290_v25 = vlaneseq }
   0x8   :  { %v1154_v8 = vld [vmem:[%s2142_s0 + $0x40] sm:$0xff]  ;;  %v1159_v9 = vld [vmem:[%s2142_s0 + $0x48] sm:$0xff]  ;;  %v1166_v10 = vld [vmem:[%s2142_s0 + $0x50] sm:$0xff] }
   0x9   :  { %v1171_v11 = vld [vmem:[%s2142_s0 + $0x58] sm:$0xff]  ;;  %v1178_v12 = vld [vmem:[%s2142_s0 + $0x60] sm:$0xff]  ;;  %v1183_v13 = vld [vmem:[%s2142_s0 + $0x68] sm:$0xff]  ;;  %v1253_v26 = vand.u32 127, %v290_v25 }
   0xa   :  { %48 = vmax.xlane.f32.xlu0 %v1130_v4  ;;  %50 = vmax.xlane.f32.xlu1 %v1135_v5  ;;  %v1190_v14 = vld [vmem:[%s2142_s0 + $0x70] sm:$0xff]  ;;  %v1195_v15 = vld [vmem:[%s2142_s0 + $0x78] sm:$0xff]  ;;  %v1202_v16 = vld [vmem:[%s2142_s0 + $0x80] sm:$0xff] }
   0xb   :  { %v1207_v17 = vld [vmem:[%s2142_s0 + $0x88] sm:$0xff]  ;;  %v1214_v18 = vld [vmem:[%s2142_s0 + $0x90] sm:$0xff]  ;;  %v1219_v19 = vld [vmem:[%s2142_s0 + $0x98] sm:$0xff] }
   0xc   :  { %v1226_v20 = vld [vmem:[%s2142_s0 + $0xa0] sm:$0xff]  ;;  %v1231_v21 = vld [vmem:[%s2142_s0 + $0xa8] sm:$0xff]  ;;  %v1238_v22 = vld [vmem:[%s2142_s0 + $0xb0] sm:$0xff] }
   0xd   :  { %v1243_v23 = vld [vmem:[%s2142_s0 + $0xb8] sm:$0xff]  ;;  %v1250_v24 = vld [vmem:[%s2142_s0 + $0xc0] sm:$0xff]  ;;  %s1074_s0 = smov [#allocation2]  }
   0xe   :  { %52 = vmax.xlane.f32.xlu0 %v1142_v6  ;;  %54 = vmax.xlane.f32.xlu1 %v1147_v7  ;;  %s927_s13 = sshll.u32 %s1074_s0, 4  ;;  %s928_s13 = int_to_ptr.vmem [resolvable:$true] %s927_s13 }
   0xf   :  { %s1050_s14 = scalar_lea.vmem %s928_s13, 3200  ;;  %p1055_p1 = scmp.lt.s32.totalorder %s928_s13, %s928_s13 }
  0x10   :  { %p1051_p0 = scmp.ne.s32.totalorder %s928_s13, %s1050_s14  ;;  %p1056_p2 = scmp.lt.s32.totalorder %s1050_s14, %s1050_s14 }
  0x12   :  { %56 = vmax.xlane.f32.xlu0 %v1154_v8  ;;  %58 = vmax.xlane.f32.xlu1 %v1159_v9  ;;  %p1057_p3 = por %p1056_p2, %p1055_p1 }
  0x14   :  { %p1058_p4 = pnand %p1057_p3, %p1051_p0 }
  0x16   :  { %60 = vmax.xlane.f32.xlu0 %v1166_v10  ;;  %62 = vmax.xlane.f32.xlu1 %v1171_v11 }
  0x1a   :  { %64 = vmax.xlane.f32.xlu0 %v1178_v12  ;;  %66 = vmax.xlane.f32.xlu1 %v1183_v13 }
  0x1e   :  { %68 = vmax.xlane.f32.xlu0 %v1190_v14  ;;  %70 = vmax.xlane.f32.xlu1 %v1195_v15 }
  0x22   :  { %72 = vmax.xlane.f32.xlu0 %v1202_v16  ;;  %74 = vmax.xlane.f32.xlu1 %v1207_v17 }
  0x26   :  { %76 = vmax.xlane.f32.xlu0 %v1214_v18  ;;  %78 = vmax.xlane.f32.xlu1 %v1219_v19 }
  0x2a   :  { %80 = vmax.xlane.f32.xlu0 %v1226_v20  ;;  %82 = vmax.xlane.f32.xlu1 %v1231_v21 }
  0x2e   :  { %84 = vmax.xlane.f32.xlu0 %v1238_v22  ;;  %86 = vmax.xlane.f32.xlu1 %v1243_v23 }
  0x32   :  { %88 = vmax.xlane.f32.xlu0 %v1250_v24 }
  0x8f   :  { %v1255_v27 = vpop.xlane.xlu0 %40  ;;  %v1257_v28 = vpop.xlane.xlu1 %44 }
  0x90   :  { %vm292_vm0 = vcmp.eq.f32.partialorder %v1106_v0, %v1255_v27  ;;  %vm294_vm1 = vcmp.eq.f32.partialorder %v1111_v1, %v1257_v28 }
  0x91   :  { %v1264_v29 = vsel %vm292_vm0, %v1253_v26, 128  ;;  %v1267_v30 = vsel %vm294_vm1, %v1253_v26, 128 }
  0x92   :  { %v343_v31 = vshra.s32 %v1264_v29, 16  ;;  %v371_v32 = vshra.s32 %v1267_v30, 16 }
  0x93   :  { %v1271_v33 = vpop.xlane.xlu0 %42  ;;  %v1273_v34 = vpop.xlane.xlu1 %46 }
  0x94   :  { %vm293_vm2 = vcmp.eq.f32.partialorder %v1118_v2, %v1271_v33  ;;  %v1277_v35 = vcvt.s32.f32 %v343_v31  ;;  %vm295_vm3 = vcmp.eq.f32.partialorder %v1123_v3, %v1273_v34  ;;  %v1288_v38 = vcvt.s32.f32 %v371_v32 }
  0x95   :  { %v1280_v36 = vsel %vm293_vm2, %v1253_v26, 128  ;;  %v1286_v37 = vsel %vm295_vm3, %v1253_v26, 128 }
  0x96   :  { %346 = vmin.xlane.f32.xlu1 %v1277_v35  ;;  %v357_v39 = vshra.s32 %v1280_v36, 16  ;;  %v385_v42 = vshra.s32 %v1286_v37, 16 }
  0x97   :  { %v1291_v40 = vpop.xlane.xlu0 %48  ;;  %v1293_v41 = vpop.xlane.xlu1 %50 }
  0x98   :  { %vm296_vm4 = vcmp.eq.f32.partialorder %v1130_v4, %v1291_v40  ;;  %v1298_v43 = vcvt.s32.f32 %v357_v39  ;;  %vm297_vm5 = vcmp.eq.f32.partialorder %v1135_v5, %v1293_v41  ;;  %v1310_v46 = vcvt.s32.f32 %v385_v42 }
  0x99   :  { %v1301_v44 = vsel %vm296_vm4, %v1253_v26, 128  ;;  %v1308_v45 = vsel %vm297_vm5, %v1253_v26, 128 }
  0x9a   :  { %2184 = vst [vmem:[#allocation5_spill] sm:$0xff] %v1298_v43  ;;  %374 = vmin.xlane.f32.xlu1 %v1288_v38  ;;  %360 = vmin.xlane.f32.xlu0 %v1298_v43  ;;  %2185 = vst [vmem:[#allocation6_spill] sm:$0xff] %v1308_v45  ;;  %v399_v47 = vshra.s32 %v1301_v44, 16  ;;  %v413_v50 = vshra.s32 %v1308_v45, 16 }
  0x9b   :  { %2186 = vst [vmem:[#allocation7_spill] sm:$0xff] %v1310_v46  ;;  %v1313_v48 = vpop.xlane.xlu0 %52  ;;  %v1315_v49 = vpop.xlane.xlu1 %54 }
  0x9c   :  { %vm298_vm6 = vcmp.eq.f32.partialorder %v1142_v6, %v1313_v48  ;;  %v1320_v51 = vcvt.s32.f32 %v399_v47  ;;  %vm299_vm7 = vcmp.eq.f32.partialorder %v1147_v7, %v1315_v49  ;;  %v1332_v54 = vcvt.s32.f32 %v413_v50 }
  0x9d   :  { %v1323_v52 = vsel %vm298_vm6, %v1253_v26, 128  ;;  %v1330_v53 = vsel %vm299_vm7, %v1253_v26, 128 }
  0x9e   :  { %2187 = vst [vmem:[#allocation8_spill] sm:$0xff] %v1320_v51  ;;  %2188 = vst [vmem:[#allocation9_spill] sm:$0xff] %v1323_v52  ;;  %388 = vmin.xlane.f32.xlu0 %v1310_v46  ;;  %402 = vmin.xlane.f32.xlu1 %v1320_v51  ;;  %v427_v55 = vshra.s32 %v1323_v52, 16  ;;  %v441_v58 = vshra.s32 %v1330_v53, 16 }
  0x9f   :  { %2189 = vst [vmem:[#allocation10_spill] sm:$0xff] %v1330_v53  ;;  %2190 = vst [vmem:[#allocation11_spill] sm:$0xff] %v1332_v54  ;;  %v1335_v56 = vpop.xlane.xlu0 %56  ;;  %v1337_v57 = vpop.xlane.xlu1 %58 }
  0xa0   :  { %vm300_vm8 = vcmp.eq.f32.partialorder %v1154_v8, %v1335_v56  ;;  %v1342_v59 = vcvt.s32.f32 %v427_v55  ;;  %vm301_vm9 = vcmp.eq.f32.partialorder %v1159_v9, %v1337_v57  ;;  %v1354_v62 = vcvt.s32.f32 %v441_v58 }
  0xa1   :  { %v1345_v60 = vsel %vm300_vm8, %v1253_v26, 128  ;;  %v1352_v61 = vsel %vm301_vm9, %v1253_v26, 128 }
  0xa2   :  { %2191 = vst [vmem:[#allocation12_spill] sm:$0xff] %v1342_v59  ;;  %2192 = vst [vmem:[#allocation13_spill] sm:$0xff] %v1345_v60  ;;  %416 = vmin.xlane.f32.xlu0 %v1332_v54  ;;  %430 = vmin.xlane.f32.xlu1 %v1342_v59  ;;  %v455_v63 = vshra.s32 %v1345_v60, 16  ;;  %v469_v32 = vshra.s32 %v1352_v61, 16 }
  0xa3   :  { %2193 = vst [vmem:[#allocation14_spill] sm:$0xff] %v1352_v61  ;;  %2194 = vst [vmem:[#allocation15_spill] sm:$0xff] %v1354_v62  ;;  %v1357_v25 = vpop.xlane.xlu0 %60  ;;  %v1359_v31 = vpop.xlane.xlu1 %62 }
  0xa4   :  { %vm302_vm10 = vcmp.eq.f32.partialorder %v1166_v10, %v1357_v25  ;;  %v1364_v39 = vcvt.s32.f32 %v455_v63  ;;  %vm303_vm11 = vcmp.eq.f32.partialorder %v1171_v11, %v1359_v31  ;;  %v1376_v50 = vcvt.s32.f32 %v469_v32 }
  0xa5   :  { %v1367_v42 = vsel %vm302_vm10, %v1253_v26, 128  ;;  %v1374_v47 = vsel %vm303_vm11, %v1253_v26, 128 }
  0xa6   :  { %2195 = vst [vmem:[#allocation16_spill] sm:$0xff] %v1364_v39  ;;  %2196 = vst [vmem:[#allocation17_spill] sm:$0xff] %v1367_v42  ;;  %444 = vmin.xlane.f32.xlu0 %v1354_v62  ;;  %458 = vmin.xlane.f32.xlu1 %v1364_v39  ;;  %v483_v55 = vshra.s32 %v1367_v42, 16  ;;  %v497_v61 = vshra.s32 %v1374_v47, 16 }
  0xa7   :  { %2197 = vst [vmem:[#allocation18_spill] sm:$0xff] %v1374_v47  ;;  %2198 = vst [vmem:[#allocation19_spill] sm:$0xff] %v1376_v50  ;;  %v1379_v58 = vpop.xlane.xlu0 %64  ;;  %v1381_v63 = vpop.xlane.xlu1 %66 }
  0xa8   :  { %vm304_vm12 = vcmp.eq.f32.partialorder %v1178_v12, %v1379_v58  ;;  %v1386_v54 = vcvt.s32.f32 %v483_v55  ;;  %vm305_vm13 = vcmp.eq.f32.partialorder %v1183_v13, %v1381_v63  ;;  %v1398_v39 = vcvt.s32.f32 %v497_v61 }
  0xa9   :  { %v1389_v62 = vsel %vm304_vm12, %v1253_v26, 128  ;;  %v1396_v32 = vsel %vm305_vm13, %v1253_v26, 128 }
  0xaa   :  { %2199 = vst [vmem:[#allocation20_spill] sm:$0xff] %v1386_v54  ;;  %2200 = vst [vmem:[#allocation21_spill] sm:$0xff] %v1389_v62  ;;  %472 = vmin.xlane.f32.xlu0 %v1376_v50  ;;  %486 = vmin.xlane.f32.xlu1 %v1386_v54  ;;  %v511_v47 = vshra.s32 %v1389_v62, 16  ;;  %v525_v59 = vshra.s32 %v1396_v32, 16 }
  0xab   :  { %2201 = vst [vmem:[#allocation22_spill] sm:$0xff] %v1396_v32  ;;  %2202 = vst [vmem:[#allocation23_spill] sm:$0xff] %v1398_v39  ;;  %v1401_v42 = vpop.xlane.xlu0 %68  ;;  %v1403_v55 = vpop.xlane.xlu1 %70 }
  0xac   :  { %vm306_vm14 = vcmp.eq.f32.partialorder %v1190_v14, %v1401_v42  ;;  %v1408_v53 = vcvt.s32.f32 %v511_v47  ;;  %vm307_vm15 = vcmp.eq.f32.partialorder %v1195_v15, %v1403_v55  ;;  %v1420_v54 = vcvt.s32.f32 %v525_v59 }
  0xad   :  { %v1411_v50 = vsel %vm306_vm14, %v1253_v26, 128  ;;  %v1418_v61 = vsel %vm307_vm15, %v1253_v26, 128 }
  0xae   :  { %2203 = vst [vmem:[#allocation24_spill] sm:$0xff] %v1408_v53  ;;  %2204 = vst [vmem:[#allocation25_spill] sm:$0xff] %v1411_v50  ;;  %500 = vmin.xlane.f32.xlu0 %v1398_v39  ;;  %514 = vmin.xlane.f32.xlu1 %v1408_v53  ;;  %v539_v32 = vshra.s32 %v1411_v50, 16  ;;  %v553_v60 = vshra.s32 %v1418_v61, 16 }
  0xaf   :  { %2205 = vst [vmem:[#allocation26_spill] sm:$0xff] %v1418_v61  ;;  %2206 = vst [vmem:[#allocation27_spill] sm:$0xff] %v1420_v54  ;;  %v1423_v62 = vpop.xlane.xlu0 %72  ;;  %v1425_v47 = vpop.xlane.xlu1 %74 }
  0xb0   :  { %vm308_vm0 = vcmp.eq.f32.partialorder %v1202_v16, %v1423_v62  ;;  %v1430_v46 = vcvt.s32.f32 %v539_v32  ;;  %vm309_vm1 = vcmp.eq.f32.partialorder %v1207_v17, %v1425_v47  ;;  %v1442_v53 = vcvt.s32.f32 %v553_v60 }
  0xb1   :  { %v1433_v39 = vsel %vm308_vm0, %v1253_v26, 128  ;;  %v1440_v59 = vsel %vm309_vm1, %v1253_v26, 128 }
  0xb2   :  { %2207 = vst [vmem:[#allocation28_spill] sm:$0xff] %v1430_v46  ;;  %2208 = vst [vmem:[#allocation29_spill] sm:$0xff] %v1433_v39  ;;  %528 = vmin.xlane.f32.xlu0 %v1420_v54  ;;  %542 = vmin.xlane.f32.xlu1 %v1430_v46  ;;  %v567_v61 = vshra.s32 %v1433_v39, 16  ;;  %v581_v51 = vshra.s32 %v1440_v59, 16  ;;  %v90_v54 = vsub.f32 %v1106_v0, %v1255_v27 }
  0xb3   :  { %2209 = vst [vmem:[#allocation30_spill] sm:$0xff] %v1440_v59  ;;  %2210 = vst [vmem:[#allocation31_spill] sm:$0xff] %v1442_v53  ;;  %v1445_v50 = vpop.xlane.xlu0 %76  ;;  %v1447_v32 = vpop.xlane.xlu1 %78  ;;  %v91_v0 = vsub.f32 %v1118_v2, %v1271_v33 }
  0xb4   :  { %vm310_vm2 = vcmp.eq.f32.partialorder %v1214_v18, %v1445_v50  ;;  %v1452_v45 = vcvt.s32.f32 %v567_v61  ;;  %vm311_vm3 = vcmp.eq.f32.partialorder %v1219_v19, %v1447_v32  ;;  %v1466_v59 = vcvt.s32.f32 %v581_v51 }
  0xb5   :  { %v1457_v46 = vsel %vm310_vm2, %v1253_v26, 128  ;;  %v1464_v60 = vsel %vm311_vm3, %v1253_v26, 128  ;;  %v92_v51 = vsub.f32 %v1111_v1, %v1257_v28  ;;  %v93_v1 = vsub.f32 %v1123_v3, %v1273_v34 }
  0xb6   :  { %2211 = vst [vmem:[#allocation32_spill] sm:$0xff] %v1452_v45  ;;  %2212 = vst [vmem:[#allocation33_spill] sm:$0xff] %v1457_v46  ;;  %556 = vmin.xlane.f32.xlu0 %v1442_v53  ;;  %570 = vmin.xlane.f32.xlu1 %v1452_v45  ;;  %v595_v61 = vshra.s32 %v1457_v46, 16  ;;  %v609_v52 = vshra.s32 %v1464_v60, 16  ;;  %v115_v45 = vmul.f32 1.442695, %v90_v54  ;;  %v94_v3 = vsub.f32 %v1130_v4, %v1291_v40 }
  0xb7   :  { %2213 = vst [vmem:[#allocation34_spill] sm:$0xff] %v1464_v60  ;;  %2214 = vst [vmem:[#allocation35_spill] sm:$0xff] %v1466_v59  ;;  %v1471_v27 = vpop.xlane.xlu0 %80  ;;  %v1473_v39 = vpop.xlane.xlu1 %82 }
  0xb8   :  { %vm312_vm4 = vcmp.eq.f32.partialorder %v1226_v20, %v1471_v27  ;;  %v1478_v53 = vcvt.s32.f32 %v595_v61  ;;  %vm313_vm5 = vcmp.eq.f32.partialorder %v1231_v21, %v1473_v39  ;;  %v1492_v33 = vcvt.s32.f32 %v609_v52 }
  0xb9   :  { %v1483_v46 = vsel %vm312_vm4, %v1253_v26, 128  ;;  %v1490_v2 = vsel %vm313_vm5, %v1253_v26, 128  ;;  %v117_v61 = vmul.f32 1.442695, %v91_v0  ;;  %950 = vpow2.f32 %v115_v45 }
  0xba   :  { %2215 = vst [vmem:[#allocation36_spill] sm:$0xff] %v1478_v53  ;;  %584 = vmin.xlane.f32.xlu0 %v1466_v59  ;;  %598 = vmin.xlane.f32.xlu1 %v1478_v53  ;;  %2216 = vst [vmem:[#allocation37_spill] sm:$0xff] %v1490_v2  ;;  %v623_v54 = vshra.s32 %v1483_v46, 16  ;;  %v637_v43 = vshra.s32 %v1490_v2, 16  ;;  %v119_v52 = vmul.f32 1.442695, %v92_v51 }
  0xbb   :  { %2217 = vst [vmem:[#allocation38_spill] sm:$0xff] %v1492_v33  ;;  %v1497_v28 = vpop.xlane.xlu0 %84  ;;  %v1499_v60 = vpop.xlane.xlu1 %86  ;;  %952 = vpow2.f32 %v117_v61  ;;  %v121_v51 = vmul.f32 1.442695, %v93_v1  ;;  %v96_v61 = vsub.f32 %v1142_v6, %v1313_v48  ;;  %v98_v6 = vsub.f32 %v1154_v8, %v1335_v56 }
  0xbc   :  { %vm314_vm6 = vcmp.eq.f32.partialorder %v1238_v22, %v1497_v28  ;;  %v1504_v59 = vcvt.s32.f32 %v623_v54  ;;  %vm315_vm7 = vcmp.eq.f32.partialorder %v1243_v23, %v1499_v60  ;;  %v1518_v0 = vcvt.s32.f32 %v637_v43 }
  0xbd   :  { %v1507_v53 = vsel %vm314_vm6, %v1253_v26, 128  ;;  %v1516_v34 = vsel %vm315_vm7, %v1253_v26, 128  ;;  %v95_v54 = vsub.f32 %v1135_v5, %v1293_v41  ;;  %954 = vpow2.f32 %v119_v52 }
  0xbe   :  { %612 = vmin.xlane.f32.xlu0 %v1492_v33  ;;  %626 = vmin.xlane.f32.xlu1 %v1504_v59  ;;  %v651_v45 = vshra.s32 %v1507_v53, 16  ;;  %v665_v4 = vshra.s32 %v1516_v34, 16  ;;  %v123_v33 = vmul.f32 1.442695, %v94_v3  ;;  %956 = vpow2.f32 %v121_v51 }
  0xbf   :  { %v1523_v2 = vpop.xlane.xlu0 %88  ;;  %v125_v1 = vmul.f32 1.442695, %v95_v54  ;;  %v97_v52 = vsub.f32 %v1147_v7, %v1315_v49  ;;  %v99_v51 = vsub.f32 %v1159_v9, %v1337_v57  ;;  %v131_v7 = vmul.f32 1.442695, %v98_v6 }
  0xc0   :  { %vm316_vm8 = vcmp.eq.f32.partialorder %v1250_v24, %v1523_v2  ;;  %v1528_v40 = vcvt.s32.f32 %v651_v45  ;;  %v1537_v5 = vcvt.s32.f32 %v665_v4  ;;  %958 = vpow2.f32 %v123_v33 }
  0xc1   :  { %v1531_v43 = vsel %vm316_vm8, %v1253_v26, 128  ;;  %v127_v26 = vmul.f32 1.442695, %v96_v61  ;;  %960 = vpow2.f32 %v125_v1  ;;  %v129_v3 = vmul.f32 1.442695, %v97_v52 }
  0xc2   :  { %640 = vmin.xlane.f32.xlu0 %v1518_v0  ;;  %654 = vmin.xlane.f32.xlu1 %v1528_v40  ;;  %v679_v41 = vshra.s32 %v1531_v43, 16  ;;  %v100_v49 = vsub.f32 %v1166_v10, %v1357_v25  ;;  %v133_v56 = vmul.f32 1.442695, %v99_v51  ;;  %v101_v33 = vsub.f32 %v1171_v11, %v1359_v31 }
  0xc3   :  { %v1548_v48 = vpop.eup %950  ;;  %962 = vpow2.f32 %v127_v26  ;;  %v102_v57 = vsub.f32 %v1178_v12, %v1379_v58  ;;  %v103_v25 = vsub.f32 %v1183_v13, %v1381_v63  ;;  %v104_v31 = vsub.f32 %v1190_v14, %v1401_v42 }
  0xc4   :  { %v1542_v45 = vcvt.s32.f32 %v679_v41  ;;  %964 = vpow2.f32 %v129_v3  ;;  %v135_v9 = vmul.f32 1.442695, %v100_v49  ;;  %v137_v10 = vmul.f32 1.442695, %v101_v33 }
  0xc5   :  { %v1552_v54 = vpop.eup %952  ;;  %966 = vpow2.f32 %v131_v7  ;;  %v139_v11 = vmul.f32 1.442695, %v102_v57  ;;  %v141_v12 = vmul.f32 1.442695, %v103_v25  ;;  %v105_v58 = vsub.f32 %v1195_v15, %v1403_v55 }
  0xc6   :  { %668 = vmin.xlane.f32.xlu0 %v1537_v5  ;;  %682 = vmin.xlane.f32.xlu1 %v1542_v45  ;;  %968 = vpow2.f32 %v133_v56  ;;  %v143_v63 = vmul.f32 1.442695, %v104_v31  ;;  %v106_v52 = vsub.f32 %v1202_v16, %v1423_v62  ;;  %v107_v42 = vsub.f32 %v1207_v17, %v1425_v47 }
  0xc7   :  { %v1558_v8 = vpop.eup %954  ;;  %970 = vpow2.f32 %v135_v9  ;;  %v145_v14 = vmul.f32 1.442695, %v105_v58  ;;  %v108_v6 = vsub.f32 %v1214_v18, %v1445_v50  ;;  %v109_v62 = vsub.f32 %v1219_v19, %v1447_v32 }
  0xc8   :  { %v1562_v4 = vpop.eup %956  ;;  %972 = vpow2.f32 %v137_v10  ;;  %v147_v55 = vmul.f32 1.442695, %v106_v52  ;;  %v149_v16 = vmul.f32 1.442695, %v107_v42  ;;  %v110_v51 = vsub.f32 %v1226_v20, %v1471_v27 }
  0xc9   :  { %974 = vpow2.f32 %v139_v11  ;;  %v151_v47 = vmul.f32 1.442695, %v108_v6  ;;  %v153_v18 = vmul.f32 1.442695, %v109_v62  ;;  %v111_v50 = vsub.f32 %v1231_v21, %v1473_v39 }
  0xca   :  { %165 = vadd.xlane.f32.xlu0 %v1548_v48  ;;  %167 = vadd.xlane.f32.xlu1 %v1552_v54  ;;  %v1570_v61 = vpop.eup %958  ;;  %976 = vpow2.f32 %v141_v12  ;;  %v155_v32 = vmul.f32 1.442695, %v110_v51  ;;  %v112_v49 = vsub.f32 %v1238_v22, %v1497_v28  ;;  %v113_v27 = vsub.f32 %v1243_v23, %v1499_v60 }
  0xcb   :  { %v1572_v41 = vpop.eup %960  ;;  %978 = vpow2.f32 %v143_v63  ;;  %v157_v20 = vmul.f32 1.442695, %v111_v50  ;;  %v114_v28 = vsub.f32 %v1250_v24, %v1523_v2  ;;  %v342_v31 = vand.u32 65535, %v1264_v29 }
  0xcc   :  { %980 = vpow2.f32 %v145_v14  ;;  %v159_v39 = vmul.f32 1.442695, %v112_v49  ;;  %v161_v22 = vmul.f32 1.442695, %v113_v27  ;;  %v370_v63 = vand.u32 65535, %v1267_v30  ;;  %v2218_v30 = vld [vmem:[#allocation5_spill] sm:$0xff] }
  0xcd   :  { %v1580_v1 = vpop.eup %962  ;;  %982 = vpow2.f32 %v147_v55  ;;  %v163_v23 = vmul.f32 1.442695, %v114_v28  ;;  %v344_v58 = vcvt.s32.f32 %v342_v31  ;;  %v356_v52 = vand.u32 65535, %v1280_v36  ;;  %v2220_v49 = vld [vmem:[#allocation6_spill] sm:$0xff] }
  0xce   :  { %169 = vadd.xlane.f32.xlu0 %v1558_v8  ;;  %171 = vadd.xlane.f32.xlu1 %v1562_v4  ;;  %v1582_v13 = vpop.eup %964  ;;  %984 = vpow2.f32 %v149_v16  ;;  %v372_v6 = vcvt.s32.f32 %v370_v63  ;;  %v398_v29 = vand.u32 65535, %v1301_v44  ;;  %v384_v62 = vand.u32 65535, %v1286_v37 }
  0xcf   :  { %v1590_v26 = vpop.eup %966  ;;  %986 = vpow2.f32 %v151_v47  ;;  %v358_v16 = vcvt.s32.f32 %v356_v52  ;;  %v412_v37 = vand.u32 65535, %v2220_v49  ;;  %v2224_v52 = vld [vmem:[#allocation10_spill] sm:$0xff] }
  0xd0   :  { %v1592_v15 = vpop.eup %968  ;;  %988 = vpow2.f32 %v153_v18  ;;  %v400_v18 = vcvt.s32.f32 %v398_v29  ;;  %v386_v50 = vcvt.s32.f32 %v384_v62 }
  0xd1   :  { %v1600_v3 = vpop.eup %970  ;;  %990 = vpow2.f32 %v155_v32  ;;  %v2219_v32 = vld [vmem:[#allocation9_spill] sm:$0xff]  ;;  %v414_v31 = vcvt.s32.f32 %v412_v37  ;;  %v2229_v37 = vld [vmem:[#allocation16_spill] sm:$0xff] }
  0xd2   :  { %173 = vadd.xlane.f32.xlu0 %v1570_v61  ;;  %175 = vadd.xlane.f32.xlu1 %v1572_v41  ;;  %v1602_v17 = vpop.eup %972  ;;  %992 = vpow2.f32 %v157_v20  ;;  %v426_v44 = vand.u32 65535, %v2219_v32  ;;  %v2221_v20 = vld [vmem:[#allocation8_spill] sm:$0xff] }
  0xd3   :  { %v1610_v7 = vpop.eup %974  ;;  %994 = vpow2.f32 %v159_v39 }
  0xd4   :  { %v1612_v19 = vpop.eup %976  ;;  %996 = vpow2.f32 %v161_v22 }
  0xd5   :  { %v1620_v56 = vpop.eup %978  ;;  %998 = vpow2.f32 %v163_v23  ;;  %v428_v23 = vcvt.s32.f32 %v426_v44  ;;  %v2228_v44 = vld [vmem:[#allocation14_spill] sm:$0xff] }
  0xd6   :  { %177 = vadd.xlane.f32.xlu0 %v1580_v1  ;;  %179 = vadd.xlane.f32.xlu1 %v1582_v13  ;;  %v1622_v21 = vpop.eup %980  ;;  %v468_v49 = vand.u32 65535, %v2228_v44 }
  0xd7   :  { %v1628_v33 = vpop.eup %982 }
  0xd8   :  { %v1630_v9 = vpop.eup %984 }
  0xd9   :  { %v1634_v60 = vpop.eup %986 }
  0xda   :  { %181 = vadd.xlane.f32.xlu0 %v1590_v26  ;;  %183 = vadd.xlane.f32.xlu1 %v1592_v15  ;;  %v1636_v57 = vpop.eup %988 }
  0xdb   :  { %v1640_v24 = vpop.eup %990 }
  0xdc   :  { %v1642_v2 = vpop.eup %992 }
  0xdd   :  { %v1646_v10 = vpop.eup %994 }
  0xde   :  { %185 = vadd.xlane.f32.xlu0 %v1600_v3  ;;  %187 = vadd.xlane.f32.xlu1 %v1602_v17  ;;  %v1648_v25 = vpop.eup %996 }
  0xdf   :  { %v1652_v11 = vpop.eup %998 }
  0xe2   :  { %189 = vadd.xlane.f32.xlu0 %v1610_v7  ;;  %191 = vadd.xlane.f32.xlu1 %v1612_v19 }
  0xe6   :  { %193 = vadd.xlane.f32.xlu0 %v1620_v56  ;;  %195 = vadd.xlane.f32.xlu1 %v1622_v21 }
  0xea   :  { %197 = vadd.xlane.f32.xlu0 %v1628_v33  ;;  %199 = vadd.xlane.f32.xlu1 %v1630_v9 }
  0xee   :  { %201 = vadd.xlane.f32.xlu0 %v1634_v60  ;;  %203 = vadd.xlane.f32.xlu1 %v1636_v57 }
  0xf2   :  { %205 = vadd.xlane.f32.xlu0 %v1640_v24  ;;  %207 = vadd.xlane.f32.xlu1 %v1642_v2 }
  0xf6   :  { %209 = vadd.xlane.f32.xlu0 %v1646_v10  ;;  %211 = vadd.xlane.f32.xlu1 %v1648_v25 }
  0xfa   :  { %213 = vadd.xlane.f32.xlu0 %v1652_v11 }
 0x123   :  { %v1656_v12 = vpop.xlane.xlu1 %346 }
 0x124   :  { %vm348_vm9 = vcmp.eq.f32.partialorder %v1277_v35, %v1656_v12 }
 0x125   :  { %v349_v14 = vsel %vm348_vm9, %v344_v58, inf  ;;  %v2223_v58 = vld [vmem:[#allocation13_spill] sm:$0xff] }
 0x126   :  { %350 = vmin.xlane.f32.xlu1 %v349_v14  ;;  %v454_v63 = vand.u32 65535, %v2223_v58  ;;  %v440_v14 = vand.u32 65535, %v2224_v52  ;;  %v470_v58 = vcvt.s32.f32 %v468_v49  ;;  %v2237_v49 = vld [vmem:[#allocation25_spill] sm:$0xff] }
 0x127   :  { %v1662_v42 = vpop.xlane.xlu1 %374  ;;  %v1664_v55 = vpop.xlane.xlu0 %360 }
 0x128   :  { %vm376_vm10 = vcmp.eq.f32.partialorder %v1288_v38, %v1662_v42  ;;  %vm362_vm11 = vcmp.eq.f32.partialorder %v2218_v30, %v1664_v55  ;;  %v2222_v38 = vld [vmem:[#allocation7_spill] sm:$0xff] }
 0x129   :  { %v377_v36 = vsel %vm376_vm10, %v372_v6, inf  ;;  %v363_v35 = vsel %vm362_vm11, %v358_v16, inf  ;;  %v2225_v6 = vld [vmem:[#allocation12_spill] sm:$0xff]  ;;  %v2226_v16 = vld [vmem:[#allocation11_spill] sm:$0xff] }
 0x12a   :  { %378 = vmin.xlane.f32.xlu1 %v377_v36  ;;  %364 = vmin.xlane.f32.xlu0 %v363_v35  ;;  %v456_v35 = vcvt.s32.f32 %v454_v63  ;;  %v2231_v63 = vld [vmem:[#allocation21_spill] sm:$0xff] }
 0x12b   :  { %v1672_v47 = vpop.xlane.xlu1 %402  ;;  %v1674_v51 = vpop.xlane.xlu0 %388  ;;  %v510_v52 = vand.u32 65535, %v2231_v63  ;;  %v2240_v63 = vld [vmem:[#allocation23_spill] sm:$0xff] }
 0x12c   :  { %vm404_vm12 = vcmp.eq.f32.partialorder %v2221_v20, %v1672_v47  ;;  %vm390_vm13 = vcmp.eq.f32.partialorder %v2222_v38, %v1674_v51  ;;  %v2230_v20 = vld [vmem:[#allocation15_spill] sm:$0xff] }
 0x12d   :  { %v405_v27 = vsel %vm404_vm12, %v400_v18, inf  ;;  %v391_v39 = vsel %vm390_vm13, %v386_v50, inf  ;;  %v442_v18 = vcvt.s32.f32 %v440_v14  ;;  %v2227_v50 = vld [vmem:[#allocation17_spill] sm:$0xff]  ;;  %v2232_v14 = vld [vmem:[#allocation18_spill] sm:$0xff] }
 0x12e   :  { %406 = vmin.xlane.f32.xlu1 %v405_v27  ;;  %392 = vmin.xlane.f32.xlu0 %v391_v39  ;;  %v482_v32 = vand.u32 65535, %v2227_v50 }
 0x12f   :  { %v1682_v22 = vpop.xlane.xlu1 %430  ;;  %v1684_v28 = vpop.xlane.xlu0 %416 }
 0x130   :  { %vm432_vm14 = vcmp.eq.f32.partialorder %v2225_v6, %v1682_v22  ;;  %vm418_vm15 = vcmp.eq.f32.partialorder %v2226_v16, %v1684_v28  ;;  %v496_v6 = vand.u32 65535, %v2232_v14  ;;  %v2233_v16 = vld [vmem:[#allocation20_spill] sm:$0xff] }
 0x131   :  { %v433_v29 = vsel %vm432_vm14, %v428_v23, inf  ;;  %v419_v62 = vsel %vm418_vm15, %v414_v31, inf  ;;  %v484_v31 = vcvt.s32.f32 %v482_v32  ;;  %v512_v32 = vcvt.s32.f32 %v510_v52 }
 0x132   :  { %434 = vmin.xlane.f32.xlu1 %v433_v29  ;;  %420 = vmin.xlane.f32.xlu0 %v419_v62  ;;  %v2234_v29 = vld [vmem:[#allocation19_spill] sm:$0xff]  ;;  %v498_v44 = vcvt.s32.f32 %v496_v6 }
 0x133   :  { %v1692_v30 = vpop.xlane.xlu1 %458  ;;  %v1694_v36 = vpop.xlane.xlu0 %444 }
 0x134   :  { %vm460_vm0 = vcmp.eq.f32.partialorder %v2229_v37, %v1692_v30  ;;  %vm446_vm1 = vcmp.eq.f32.partialorder %v2230_v20, %v1694_v36  ;;  %v538_v37 = vand.u32 65535, %v2237_v49  ;;  %v2238_v20 = vld [vmem:[#allocation22_spill] sm:$0xff] }
 0x135   :  { %v461_v38 = vsel %vm460_vm0, %v456_v35, inf  ;;  %v447_v27 = vsel %vm446_vm1, %v442_v18, inf }
 0x136   :  { %462 = vmin.xlane.f32.xlu1 %v461_v38  ;;  %448 = vmin.xlane.f32.xlu0 %v447_v27  ;;  %v524_v38 = vand.u32 65535, %v2238_v20  ;;  %v2239_v27 = vld [vmem:[#allocation24_spill] sm:$0xff]  ;;  %v540_v52 = vcvt.s32.f32 %v538_v37 }
 0x137   :  { %v1702_v39 = vpop.xlane.xlu1 %486  ;;  %v1704_v23 = vpop.xlane.xlu0 %472  ;;  %v2244_v20 = vld [vmem:[#allocation28_spill] sm:$0xff] }
 0x138   :  { %vm488_vm2 = vcmp.eq.f32.partialorder %v2233_v16, %v1702_v39  ;;  %vm474_vm3 = vcmp.eq.f32.partialorder %v2234_v29, %v1704_v23  ;;  %v526_v6 = vcvt.s32.f32 %v524_v38  ;;  %v2242_v29 = vld [vmem:[#allocation29_spill] sm:$0xff] }
 0x139   :  { %v489_v62 = vsel %vm488_vm2, %v484_v31, inf  ;;  %v475_v35 = vsel %vm474_vm3, %v470_v58, inf }
 0x13a   :  { %490 = vmin.xlane.f32.xlu1 %v489_v62  ;;  %476 = vmin.xlane.f32.xlu0 %v475_v35  ;;  %v566_v62 = vand.u32 65535, %v2242_v29  ;;  %v2243_v35 = vld [vmem:[#allocation26_spill] sm:$0xff] }
 0x13b   :  { %v1712_v18 = vpop.xlane.xlu1 %514  ;;  %v1714_v50 = vpop.xlane.xlu0 %500  ;;  %v552_v49 = vand.u32 65535, %v2243_v35 }
 0x13c   :  { %2235 = vst [vmem:[#allocation5_spill] sm:$0xff] %v1712_v18  ;;  %2236 = vst [vmem:[#allocation9_spill] sm:$0xff] %v1714_v50  ;;  %vm516_vm4 = vcmp.eq.f32.partialorder %v2239_v27, %v1712_v18  ;;  %vm502_vm5 = vcmp.eq.f32.partialorder %v2240_v63, %v1714_v50  ;;  %v2245_v27 = vld [vmem:[#allocation27_spill] sm:$0xff]  ;;  %v568_v37 = vcvt.s32.f32 %v566_v62  ;;  %v2247_v50 = vld [vmem:[#allocation30_spill] sm:$0xff] }
 0x13d   :  { %v517_v31 = vsel %vm516_vm4, %v512_v32, inf  ;;  %v503_v58 = vsel %vm502_vm5, %v498_v44, inf  ;;  %v554_v38 = vcvt.s32.f32 %v552_v49  ;;  %v580_v35 = vand.u32 65535, %v2247_v50  ;;  %v2248_v18 = vld [vmem:[#allocation32_spill] sm:$0xff] }
 0x13e   :  { %518 = vmin.xlane.f32.xlu1 %v517_v31  ;;  %504 = vmin.xlane.f32.xlu0 %v503_v58  ;;  %v2246_v58 = vld [vmem:[#allocation33_spill] sm:$0xff] }
 0x13f   :  { %v1722_v14 = vpop.xlane.xlu1 %542  ;;  %v1724_v16 = vpop.xlane.xlu0 %528  ;;  %v594_v29 = vand.u32 65535, %v2246_v58  ;;  %v582_v49 = vcvt.s32.f32 %v580_v35  ;;  %v2250_v58 = vld [vmem:[#allocation34_spill] sm:$0xff] }
 0x140   :  { %2241 = vst [vmem:[#allocation6_spill] sm:$0xff] %v1724_v16  ;;  %vm544_vm6 = vcmp.eq.f32.partialorder %v2244_v20, %v1722_v14  ;;  %vm530_vm7 = vcmp.eq.f32.partialorder %v2245_v27, %v1724_v16  ;;  %v2249_v20 = vld [vmem:[#allocation31_spill] sm:$0xff]  ;;  %v608_v50 = vand.u32 65535, %v2250_v58  ;;  %v2251_v16 = vld [vmem:[#allocation36_spill] sm:$0xff] }
 0x141   :  { %v545_v32 = vsel %vm544_vm6, %v540_v52, inf  ;;  %v531_v44 = vsel %vm530_vm7, %v526_v6, inf  ;;  %v596_v62 = vcvt.s32.f32 %v594_v29 }
 0x142   :  { %546 = vmin.xlane.f32.xlu1 %v545_v32  ;;  %532 = vmin.xlane.f32.xlu0 %v531_v44  ;;  %v622_v44 = vand.u32 65535, %v1483_v46  ;;  %v610_v35 = vcvt.s32.f32 %v608_v50  ;;  %v650_v46 = vand.u32 65535, %v1507_v53 }
 0x143   :  { %v1732_v63 = vpop.xlane.xlu1 %570  ;;  %v1734_v31 = vpop.xlane.xlu0 %556 }
 0x144   :  { %vm572_vm8 = vcmp.eq.f32.partialorder %v2248_v18, %v1732_v63  ;;  %vm558_vm9 = vcmp.eq.f32.partialorder %v2249_v20, %v1734_v31  ;;  %v2252_v18 = vld [vmem:[#allocation35_spill] sm:$0xff]  ;;  %v624_v29 = vcvt.s32.f32 %v622_v44  ;;  %v652_v53 = vcvt.s32.f32 %v650_v46 }
 0x145   :  { %v573_v52 = vsel %vm572_vm8, %v568_v37, inf  ;;  %v559_v6 = vsel %vm558_vm9, %v554_v38, inf }
 0x146   :  { %574 = vmin.xlane.f32.xlu1 %v573_v52  ;;  %560 = vmin.xlane.f32.xlu0 %v559_v6  ;;  %v2253_v6 = vld [vmem:[#allocation37_spill] sm:$0xff] }
 0x147   :  { %v1742_v27 = vpop.xlane.xlu1 %598  ;;  %v1744_v32 = vpop.xlane.xlu0 %584  ;;  %v636_v58 = vand.u32 65535, %v2253_v6 }
 0x148   :  { %vm600_vm10 = vcmp.eq.f32.partialorder %v2251_v16, %v1742_v27  ;;  %vm586_vm11 = vcmp.eq.f32.partialorder %v2252_v18, %v1744_v32  ;;  %v2254_v16 = vld [vmem:[#allocation38_spill] sm:$0xff]  ;;  %v664_v18 = vand.u32 65535, %v1516_v34 }
 0x149   :  { %v601_v37 = vsel %vm600_vm10, %v596_v62, inf  ;;  %v587_v38 = vsel %vm586_vm11, %v582_v49, inf }
 0x14a   :  { %602 = vmin.xlane.f32.xlu1 %v601_v37  ;;  %588 = vmin.xlane.f32.xlu0 %v587_v38  ;;  %v678_v37 = vand.u32 65535, %v1531_v43  ;;  %v638_v38 = vcvt.s32.f32 %v636_v58  ;;  %v666_v6 = vcvt.s32.f32 %v664_v18 }
 0x14b   :  { %v1752_v20 = vpop.xlane.xlu1 %626  ;;  %v1754_v52 = vpop.xlane.xlu0 %612 }
 0x14c   :  { %vm628_vm12 = vcmp.eq.f32.partialorder %v1504_v59, %v1752_v20  ;;  %vm614_vm13 = vcmp.eq.f32.partialorder %v2254_v16, %v1754_v52  ;;  %v680_v43 = vcvt.s32.f32 %v678_v37 }
 0x14d   :  { %v629_v62 = vsel %vm628_vm12, %v624_v29, inf  ;;  %v615_v49 = vsel %vm614_vm13, %v610_v35, inf }
 0x14e   :  { %630 = vmin.xlane.f32.xlu1 %v629_v62  ;;  %616 = vmin.xlane.f32.xlu0 %v615_v49 }
 0x14f   :  { %v1764_v44 = vpop.xlane.xlu1 %654  ;;  %v1766_v50 = vpop.xlane.xlu0 %640 }
 0x150   :  { %vm656_vm14 = vcmp.eq.f32.partialorder %v1528_v40, %v1764_v44  ;;  %vm642_vm15 = vcmp.eq.f32.partialorder %v1518_v0, %v1766_v50 }
 0x151   :  { %v657_v59 = vsel %vm656_vm14, %v652_v53, inf  ;;  %v643_v29 = vsel %vm642_vm15, %v638_v38, inf }
 0x152   :  { %658 = vmin.xlane.f32.xlu1 %v657_v59  ;;  %644 = vmin.xlane.f32.xlu0 %v643_v29 }
 0x153   :  { %v1772_v35 = vpop.xlane.xlu1 %682  ;;  %v1774_v34 = vpop.xlane.xlu0 %668 }
 0x154   :  { %vm684_vm0 = vcmp.eq.f32.partialorder %v1542_v45, %v1772_v35  ;;  %vm670_vm1 = vcmp.eq.f32.partialorder %v1537_v5, %v1774_v34 }
 0x155   :  { %v685_v40 = vsel %vm684_vm0, %v680_v43, inf  ;;  %v671_v46 = vsel %vm670_vm1, %v666_v6, inf }
 0x156   :  { %686 = vmin.xlane.f32.xlu1 %v685_v40  ;;  %672 = vmin.xlane.f32.xlu0 %v671_v46 }
 0x157   :  { %v168_v0 = vpop.xlane.xlu1 %167  ;;  %v166_v58 = vpop.xlane.xlu0 %165 }
 0x158   :  { %1000 = vrcp.f32 %v168_v0 }
 0x159   :  { %1002 = vrcp.f32 %v166_v58 }
 0x15b   :  { %v172_v16 = vpop.xlane.xlu1 %171  ;;  %v170_v62 = vpop.xlane.xlu0 %169 }
 0x15c   :  { %1004 = vrcp.f32 %v172_v16 }
 0x15d   :  { %1006 = vrcp.f32 %v170_v62 }
 0x15f   :  { %v176_v49 = vpop.xlane.xlu1 %175  ;;  %v174_v18 = vpop.xlane.xlu0 %173 }
 0x160   :  { %1008 = vrcp.f32 %v176_v49 }
 0x161   :  { %1010 = vrcp.f32 %v174_v18 }
 0x162   :  { %v1001_v45 = vpop.eup %1000 }
 0x163   :  { %v1003_v37 = vpop.eup %1002  ;;  %v241_v5 = vmul.f32 %v1001_v45, %v1552_v54  ;;  %v180_v53 = vpop.xlane.xlu1 %179 }
 0x164   :  { %v178_v38 = vpop.xlane.xlu0 %177  ;;  %v240_v59 = vmul.f32 %v1003_v37, %v1548_v48  ;;  %1012 = vrcp.f32 %v180_v53 }
 0x165   :  { %266 = vst [vmem:[#allocation2 + $0x8] sm:$0xff] %v241_v5  ;;  %1014 = vrcp.f32 %v178_v38 }
 0x166   :  { %v1005_v29 = vpop.eup %1004  ;;  %265 = vst [vmem:[#allocation2] sm:$0xff] %v240_v59 }
 0x167   :  { %v1007_v43 = vpop.eup %1006  ;;  %v243_v6 = vmul.f32 %v1005_v29, %v1562_v4  ;;  %v184_v40 = vpop.xlane.xlu1 %183 }
 0x168   :  { %v182_v46 = vpop.xlane.xlu0 %181  ;;  %v242_v0 = vmul.f32 %v1007_v43, %v1558_v8  ;;  %1016 = vrcp.f32 %v184_v40 }
 0x169   :  { %268 = vst [vmem:[#allocation2 + $0x18] sm:$0xff] %v243_v6  ;;  %1018 = vrcp.f32 %v182_v46 }
 0x16a   :  { %v1009_v54 = vpop.eup %1008  ;;  %267 = vst [vmem:[#allocation2 + $0x10] sm:$0xff] %v242_v0 }
 0x16b   :  { %v1011_v58 = vpop.eup %1010  ;;  %v245_v48 = vmul.f32 %v1009_v54, %v1572_v41  ;;  %v188_v16 = vpop.xlane.xlu1 %187 }
 0x16c   :  { %v186_v62 = vpop.xlane.xlu0 %185  ;;  %v244_v49 = vmul.f32 %v1011_v58, %v1570_v61  ;;  %1020 = vrcp.f32 %v188_v16 }
 0x16d   :  { %270 = vst [vmem:[#allocation2 + $0x28] sm:$0xff] %v245_v48  ;;  %1022 = vrcp.f32 %v186_v62 }
 0x16e   :  { %v1013_v4 = vpop.eup %1012  ;;  %269 = vst [vmem:[#allocation2 + $0x20] sm:$0xff] %v244_v49 }
 0x16f   :  { %v1015_v18 = vpop.eup %1014  ;;  %v247_v8 = vmul.f32 %v1013_v4, %v1582_v13  ;;  %v192_v45 = vpop.xlane.xlu1 %191 }
 0x170   :  { %v190_v37 = vpop.xlane.xlu0 %189  ;;  %v246_v5 = vmul.f32 %v1015_v18, %v1580_v1  ;;  %1024 = vrcp.f32 %v192_v45 }
 0x171   :  { %272 = vst [vmem:[#allocation2 + $0x38] sm:$0xff] %v247_v8  ;;  %1026 = vrcp.f32 %v190_v37 }
 0x172   :  { %v1017_v41 = vpop.eup %1016  ;;  %271 = vst [vmem:[#allocation2 + $0x30] sm:$0xff] %v246_v5 }
 0x173   :  { %v1019_v53 = vpop.eup %1018  ;;  %v249_v61 = vmul.f32 %v1017_v41, %v1592_v15  ;;  %v196_v38 = vpop.xlane.xlu1 %195 }
 0x174   :  { %v194_v59 = vpop.xlane.xlu0 %193  ;;  %v248_v29 = vmul.f32 %v1019_v53, %v1590_v26  ;;  %1028 = vrcp.f32 %v196_v38 }
 0x175   :  { %274 = vst [vmem:[#allocation2 + $0x48] sm:$0xff] %v249_v61  ;;  %1030 = vrcp.f32 %v194_v59 }
 0x176   :  { %v1021_v13 = vpop.eup %1020  ;;  %273 = vst [vmem:[#allocation2 + $0x40] sm:$0xff] %v248_v29 }
 0x177   :  { %v1023_v43 = vpop.eup %1022  ;;  %v251_v1 = vmul.f32 %v1021_v13, %v1602_v17  ;;  %v200_v6 = vpop.xlane.xlu1 %199 }
 0x178   :  { %v198_v40 = vpop.xlane.xlu0 %197  ;;  %v250_v46 = vmul.f32 %v1023_v43, %v1600_v3  ;;  %1032 = vrcp.f32 %v200_v6 }
 0x179   :  { %276 = vst [vmem:[#allocation2 + $0x58] sm:$0xff] %v251_v1  ;;  %1034 = vrcp.f32 %v198_v40 }
 0x17a   :  { %v1025_v15 = vpop.eup %1024  ;;  %275 = vst [vmem:[#allocation2 + $0x50] sm:$0xff] %v250_v46 }
 0x17b   :  { %v1027_v0 = vpop.eup %1026  ;;  %v253_v26 = vmul.f32 %v1025_v15, %v1612_v19  ;;  %v204_v54 = vpop.xlane.xlu1 %203 }
 0x17c   :  { %v202_v58 = vpop.xlane.xlu0 %201  ;;  %v252_v48 = vmul.f32 %v1027_v0, %v1610_v7  ;;  %1036 = vrcp.f32 %v204_v54 }
 0x17d   :  { %278 = vst [vmem:[#allocation2 + $0x68] sm:$0xff] %v253_v26  ;;  %1038 = vrcp.f32 %v202_v58 }
 0x17e   :  { %v1029_v17 = vpop.eup %1028  ;;  %277 = vst [vmem:[#allocation2 + $0x60] sm:$0xff] %v252_v48 }
 0x17f   :  { %v1031_v16 = vpop.eup %1030  ;;  %v255_v3 = vmul.f32 %v1029_v17, %v1622_v21  ;;  %v208_v62 = vpop.xlane.xlu1 %207 }
 0x180   :  { %v206_v49 = vpop.xlane.xlu0 %205  ;;  %v254_v4 = vmul.f32 %v1031_v16, %v1620_v56  ;;  %1040 = vrcp.f32 %v208_v62 }
 0x181   :  { %280 = vst [vmem:[#allocation2 + $0x78] sm:$0xff] %v255_v3  ;;  %1042 = vrcp.f32 %v206_v49 }
 0x182   :  { %v1033_v19 = vpop.eup %1032  ;;  %279 = vst [vmem:[#allocation2 + $0x70] sm:$0xff] %v254_v4 }
 0x183   :  { %v1035_v18 = vpop.eup %1034  ;;  %v257_v7 = vmul.f32 %v1033_v19, %v1630_v9  ;;  %v212_v8 = vpop.xlane.xlu1 %211 }
 0x184   :  { %v210_v45 = vpop.xlane.xlu0 %209  ;;  %v256_v37 = vmul.f32 %v1035_v18, %v1628_v33  ;;  %1044 = vrcp.f32 %v212_v8 }
 0x185   :  { %282 = vst [vmem:[#allocation2 + $0x88] sm:$0xff] %v257_v7  ;;  %1046 = vrcp.f32 %v210_v45 }
 0x186   :  { %v1037_v21 = vpop.eup %1036  ;;  %281 = vst [vmem:[#allocation2 + $0x80] sm:$0xff] %v256_v37 }
 0x187   :  { %v1039_v5 = vpop.eup %1038  ;;  %v259_v56 = vmul.f32 %v1037_v21, %v1636_v57 }
 0x188   :  { %v214_v41 = vpop.xlane.xlu0 %213  ;;  %v258_v53 = vmul.f32 %v1039_v5, %v1634_v60 }
 0x189   :  { %1048 = vrcp.f32 %v214_v41  ;;  %284 = vst [vmem:[#allocation2 + $0x98] sm:$0xff] %v259_v56 }
 0x18a   :  { %v1041_v61 = vpop.eup %1040  ;;  %283 = vst [vmem:[#allocation2 + $0x90] sm:$0xff] %v258_v53 }
 0x18b   :  { %v1043_v9 = vpop.eup %1042  ;;  %v261_v38 = vmul.f32 %v1041_v61, %v1642_v2 }
 0x18c   :  { %v260_v33 = vmul.f32 %v1043_v9, %v1640_v24 }
 0x18d   :  { %286 = vst [vmem:[#allocation2 + $0xa8] sm:$0xff] %v261_v38 }
 0x18e   :  { %v1045_v59 = vpop.eup %1044  ;;  %285 = vst [vmem:[#allocation2 + $0xa0] sm:$0xff] %v260_v33 }
 0x18f   :  { %v1047_v29 = vpop.eup %1046  ;;  %v263_v13 = vmul.f32 %v1045_v59, %v1648_v25 }
 0x190   :  { %v262_v57 = vmul.f32 %v1047_v29, %v1646_v10 }
 0x191   :  { %288 = vst [vmem:[#allocation2 + $0xb8] sm:$0xff] %v263_v13 }
 0x192   :  { %287 = vst [vmem:[#allocation2 + $0xb0] sm:$0xff] %v262_v57 }
 0x193   :  { %v1049_v60 = vpop.eup %1048 }
 0x194   :  { %v264_v43 = vmul.f32 %v1049_v60, %v1652_v11 }
 0x196   :  { %289 = vst [vmem:[#allocation2 + $0xc0] sm:$0xff] %v264_v43 }
 0x197   :  { %1061 = shalt.err (!%p1058_p4)
}
 0x198   :  { %s1062_s17 = scalar_lea.hbm %s2144_s2, 3200 }
 0x199   :  { %p1063_p5 = scmp.ne.s32.totalorder %s2144_s2, %s1062_s17  ;;  %p1066_p6 = scmp.lt.u32.totalorder %s1062_s17, %s2144_s2 }
 0x19b   :  { %p1068_p7 = pnand %p1066_p6, %p1063_p5 }
 0x19d   :  { %1071 = shalt.err (!%p1068_p7)
}
 0x19e   :  { %s1075_s22 = smov 128   ;;  %s1076_s23 = smov 8   ;;  %v353_v24 = vcvt.f32.s32 %v1656_v12  ;;  %v381_v2 = vcvt.f32.s32 %v1662_v42  ;;  %v367_v11 = vcvt.f32.s32 %v1664_v55  ;;  %vm692_vm2 = vcmask 7168   ;;  %v720_v6 = vld [vmem:[%s2143_s1] sm:$0xff]  ;;  %v723_v37 = vld [vmem:[%s2143_s1 + $0x18] sm:$0xff]  ;;  %v726_v29 = vld [vmem:[%s2143_s1 + $0x30] sm:$0xff] }
 0x19f   :  { %933 = dma.vmem_to_hbm [thread:$0]  %s928_s13, 3200, %s2144_s2, [#allocation3], %s1075_s22, %s1075_s22, %s1076_s23   ;;  %v409_v15 = vcvt.f32.s32 %v1672_v47  ;;  %v395_v0 = vcvt.f32.s32 %v1674_v51  ;;  %v1077_v58 = vmov 0   ;;  %v437_v49 = vcvt.f32.s32 %v1682_v22 }
 0x1a0   :  { %v354_v25 = vshll.u32 %v353_v24, 16  ;;  %v382_v46 = vshll.u32 %v381_v2, 16  ;;  %v368_v54 = vshll.u32 %v367_v11, 16  ;;  %v722_v47 = vld [vmem:[%s2143_s1 + $0x10] sm:$0xff]  ;;  %v721_v51 = vld [vmem:[%s2143_s1 + $0x8] sm:$0xff]  ;;  %v423_v4 = vcvt.f32.s32 %v1684_v28  ;;  %v724_v45 = vld [vmem:[%s2143_s1 + $0x20] sm:$0xff] }
 0x1a1   :  { %v410_v3 = vshll.u32 %v409_v15, 16  ;;  %v396_v62 = vshll.u32 %v395_v0, 16  ;;  %v438_v56 = vshll.u32 %v437_v49, 16  ;;  %v465_v53 = vcvt.f32.s32 %v1692_v30  ;;  %v725_v13 = vld [vmem:[%s2143_s1 + $0x28] sm:$0xff]  ;;  %v730_v49 = vld [vmem:[%s2143_s1 + $0x50] sm:$0xff] }
 0x1a2   :  { %v424_v41 = vshll.u32 %v423_v4, 16  ;;  %v451_v61 = vcvt.f32.s32 %v1694_v36  ;;  %v493_v2 = vcvt.f32.s32 %v1702_v39  ;;  %v729_v4 = vld [vmem:[%s2143_s1 + $0x48] sm:$0xff] }
 0x1a3   :  { %v466_v43 = vshll.u32 %v465_v53, 16  ;;  %v732_v53 = vld [vmem:[%s2143_s1 + $0x60] sm:$0xff] }
 0x1a4   :  { %v452_v24 = vshll.u32 %v451_v61, 16  ;;  %v731_v61 = vld [vmem:[%s2143_s1 + $0x58] sm:$0xff] }
 0x1b3   :  { %v351_v10 = vpop.xlane.xlu1 %350 }
 0x1b4   :  { %v352_v1 = vcvt.f32.s32 %v351_v10  ;;  %v479_v10 = vcvt.f32.s32 %v1704_v23 }
 0x1b6   :  { %v355_v40 = vadd.s32 %v354_v25, %v352_v1 }
 0x1b7   :  { %v379_v26 = vpop.xlane.xlu1 %378  ;;  %v365_v12 = vpop.xlane.xlu0 %364 }
 0x1b8   :  { %693 = vst.msk [vmem:[%s2145_s3] sm:$0xff] %vm692_vm2, %v355_v40  ;;  %vm822_vm3 = vcmp.eq.s32.totalorder %v355_v40, %v720_v6  ;;  %v380_v42 = vcvt.f32.s32 %v379_v26  ;;  %v366_v55 = vcvt.f32.s32 %v365_v12  ;;  %v728_v40 = vld [vmem:[%s2143_s1 + $0x40] sm:$0xff]  ;;  %v494_v26 = vshll.u32 %v493_v2, 16 }
 0x1b9   :  { %v872_v48 = vsel %vm822_vm3, 1, %v1077_v58  ;;  %v480_v12 = vshll.u32 %v479_v10, 16 }
 0x1ba   :  { %897 = vst.msk [vmem:[%s2146_s4] sm:$0xff] %vm692_vm2, %v872_v48  ;;  %v383_v17 = vadd.s32 %v382_v46, %v380_v42  ;;  %v369_v16 = vadd.s32 %v368_v54, %v366_v55  ;;  %v727_v46 = vld [vmem:[%s2143_s1 + $0x38] sm:$0xff]  ;;  %v2255_v54 = vld [vmem:[#allocation5_spill] sm:$0xff] }
 0x1bb   :  { %v407_v19 = vpop.xlane.xlu1 %406  ;;  %v393_v18 = vpop.xlane.xlu0 %392  ;;  %v521_v42 = vcvt.f32.s32 %v2255_v54  ;;  %v2256_v55 = vld [vmem:[#allocation9_spill] sm:$0xff] }
 0x1bc   :  { %695 = vst.msk [vmem:[%s2145_s3 + $0x10] sm:$0xff] %vm692_vm2, %v383_v17  ;;  %vm824_vm4 = vcmp.eq.s32.totalorder %v383_v17, %v722_v47  ;;  %694 = vst.msk [vmem:[%s2145_s3 + $0x8] sm:$0xff] %vm692_vm2, %v369_v16  ;;  %vm823_vm5 = vcmp.eq.s32.totalorder %v369_v16, %v721_v51  ;;  %v408_v7 = vcvt.f32.s32 %v407_v19  ;;  %v394_v8 = vcvt.f32.s32 %v393_v18 }
 0x1bd   :  { %v874_v22 = vsel %vm824_vm4, 1, %v1077_v58  ;;  %v873_v28 = vsel %vm823_vm5, 1, %v1077_v58  ;;  %v507_v48 = vcvt.f32.s32 %v2256_v55  ;;  %v633_v55 = vcvt.f32.s32 %v1752_v20 }
 0x1be   :  { %899 = vst.msk [vmem:[%s2146_s4 + $0x10] sm:$0xff] %vm692_vm2, %v874_v22  ;;  %898 = vst.msk [vmem:[%s2146_s4 + $0x8] sm:$0xff] %vm692_vm2, %v873_v28  ;;  %v411_v21 = vadd.s32 %v410_v3, %v408_v7  ;;  %v397_v5 = vadd.s32 %v396_v62, %v394_v8  ;;  %v522_v7 = vshll.u32 %v521_v42, 16  ;;  %v549_v22 = vcvt.f32.s32 %v1722_v14  ;;  %v2257_v28 = vld [vmem:[#allocation6_spill] sm:$0xff] }
 0x1bf   :  { %v435_v9 = vpop.xlane.xlu1 %434  ;;  %v421_v38 = vpop.xlane.xlu0 %420  ;;  %v508_v8 = vshll.u32 %v507_v48, 16  ;;  %v619_v48 = vcvt.f32.s32 %v1754_v52 }
 0x1c0   :  { %697 = vst.msk [vmem:[%s2145_s3 + $0x20] sm:$0xff] %vm692_vm2, %v411_v21  ;;  %vm826_vm6 = vcmp.eq.s32.totalorder %v411_v21, %v724_v45  ;;  %696 = vst.msk [vmem:[%s2145_s3 + $0x18] sm:$0xff] %vm692_vm2, %v397_v5  ;;  %vm825_vm7 = vcmp.eq.s32.totalorder %v397_v5, %v723_v37  ;;  %v436_v33 = vcvt.f32.s32 %v435_v9  ;;  %v422_v59 = vcvt.f32.s32 %v421_v38 }
 0x1c1   :  { %v876_v30 = vsel %vm826_vm6, 1, %v1077_v58  ;;  %v875_v36 = vsel %vm825_vm7, 1, %v1077_v58  ;;  %v535_v45 = vcvt.f32.s32 %v2257_v28 }
 0x1c2   :  { %901 = vst.msk [vmem:[%s2146_s4 + $0x20] sm:$0xff] %vm692_vm2, %v876_v30  ;;  %900 = vst.msk [vmem:[%s2146_s4 + $0x18] sm:$0xff] %vm692_vm2, %v875_v36  ;;  %v439_v57 = vadd.s32 %v438_v56, %v436_v33  ;;  %v425_v60 = vadd.s32 %v424_v41, %v422_v59  ;;  %v550_v33 = vshll.u32 %v549_v22, 16  ;;  %v577_v30 = vcvt.f32.s32 %v1732_v63 }
 0x1c3   :  { %v463_v25 = vpop.xlane.xlu1 %462  ;;  %v449_v11 = vpop.xlane.xlu0 %448  ;;  %v536_v59 = vshll.u32 %v535_v45, 16  ;;  %v563_v36 = vcvt.f32.s32 %v1734_v31 }
 0x1c4   :  { %699 = vst.msk [vmem:[%s2145_s3 + $0x30] sm:$0xff] %vm692_vm2, %v439_v57  ;;  %vm828_vm8 = vcmp.eq.s32.totalorder %v439_v57, %v726_v29  ;;  %698 = vst.msk [vmem:[%s2145_s3 + $0x28] sm:$0xff] %vm692_vm2, %v425_v60  ;;  %vm827_vm9 = vcmp.eq.s32.totalorder %v425_v60, %v725_v13  ;;  %v464_v1 = vcvt.f32.s32 %v463_v25  ;;  %v450_v6 = vcvt.f32.s32 %v449_v11 }
 0x1c5   :  { %v878_v39 = vsel %vm828_vm8, 1, %v1077_v58  ;;  %v877_v23 = vsel %vm827_vm9, 1, %v1077_v58  ;;  %v578_v25 = vshll.u32 %v577_v30, 16  ;;  %v564_v11 = vshll.u32 %v563_v36, 16  ;;  %v742_v36 = vld [vmem:[%s2143_s1 + $0xb0] sm:$0xff] }
 0x1c6   :  { %903 = vst.msk [vmem:[%s2146_s4 + $0x30] sm:$0xff] %vm692_vm2, %v878_v39  ;;  %902 = vst.msk [vmem:[%s2146_s4 + $0x28] sm:$0xff] %vm692_vm2, %v877_v23  ;;  %v467_v15 = vadd.s32 %v466_v43, %v464_v1  ;;  %v453_v0 = vadd.s32 %v452_v24, %v450_v6  ;;  %v734_v43 = vld [vmem:[%s2143_s1 + $0x70] sm:$0xff]  ;;  %v733_v24 = vld [vmem:[%s2143_s1 + $0x68] sm:$0xff]  ;;  %v605_v1 = vcvt.f32.s32 %v1742_v27  ;;  %v591_v6 = vcvt.f32.s32 %v1744_v32 }
 0x1c7   :  { %v491_v47 = vpop.xlane.xlu1 %490  ;;  %v477_v51 = vpop.xlane.xlu0 %476 }
 0x1c8   :  { %701 = vst.msk [vmem:[%s2145_s3 + $0x40] sm:$0xff] %vm692_vm2, %v467_v15  ;;  %vm830_vm10 = vcmp.eq.s32.totalorder %v467_v15, %v728_v40  ;;  %700 = vst.msk [vmem:[%s2145_s3 + $0x38] sm:$0xff] %vm692_vm2, %v453_v0  ;;  %vm829_vm11 = vcmp.eq.s32.totalorder %v453_v0, %v727_v46  ;;  %v492_v17 = vcvt.f32.s32 %v491_v47  ;;  %v478_v16 = vcvt.f32.s32 %v477_v51  ;;  %v736_v15 = vld [vmem:[%s2143_s1 + $0x80] sm:$0xff]  ;;  %v735_v0 = vld [vmem:[%s2143_s1 + $0x78] sm:$0xff] }
 0x1c9   :  { %v880_v3 = vsel %vm830_vm10, 1, %v1077_v58  ;;  %v879_v62 = vsel %vm829_vm11, 1, %v1077_v58  ;;  %v606_v54 = vshll.u32 %v605_v1, 16  ;;  %v592_v42 = vshll.u32 %v591_v6, 16  ;;  %v743_v1 = vld [vmem:[%s2143_s1 + $0xb8] sm:$0xff] }
 0x1ca   :  { %905 = vst.msk [vmem:[%s2146_s4 + $0x40] sm:$0xff] %vm692_vm2, %v880_v3  ;;  %904 = vst.msk [vmem:[%s2146_s4 + $0x38] sm:$0xff] %vm692_vm2, %v879_v62  ;;  %v495_v19 = vadd.s32 %v494_v26, %v492_v17  ;;  %v481_v18 = vadd.s32 %v480_v12, %v478_v16  ;;  %v738_v3 = vld [vmem:[%s2143_s1 + $0x90] sm:$0xff]  ;;  %v737_v62 = vld [vmem:[%s2143_s1 + $0x88] sm:$0xff] }
 0x1cb   :  { %v519_v37 = vpop.xlane.xlu1 %518  ;;  %v505_v21 = vpop.xlane.xlu0 %504 }
 0x1cc   :  { %703 = vst.msk [vmem:[%s2145_s3 + $0x50] sm:$0xff] %vm692_vm2, %v495_v19  ;;  %vm832_vm12 = vcmp.eq.s32.totalorder %v495_v19, %v730_v49  ;;  %702 = vst.msk [vmem:[%s2145_s3 + $0x48] sm:$0xff] %vm692_vm2, %v481_v18  ;;  %vm831_vm13 = vcmp.eq.s32.totalorder %v481_v18, %v729_v4  ;;  %v520_v5 = vcvt.f32.s32 %v519_v37  ;;  %v506_v56 = vcvt.f32.s32 %v505_v21  ;;  %v740_v21 = vld [vmem:[%s2143_s1 + $0xa0] sm:$0xff] }
 0x1cd   :  { %v882_v14 = vsel %vm832_vm12, 1, %v1077_v58  ;;  %v881_v41 = vsel %vm831_vm13, 1, %v1077_v58  ;;  %v634_v19 = vshll.u32 %v633_v55, 16  ;;  %v620_v18 = vshll.u32 %v619_v48, 16 }
 0x1ce   :  { %907 = vst.msk [vmem:[%s2146_s4 + $0x50] sm:$0xff] %vm692_vm2, %v882_v14  ;;  %906 = vst.msk [vmem:[%s2146_s4 + $0x48] sm:$0xff] %vm692_vm2, %v881_v41  ;;  %v523_v9 = vadd.s32 %v522_v7, %v520_v5  ;;  %v509_v38 = vadd.s32 %v508_v8, %v506_v56  ;;  %v661_v7 = vcvt.f32.s32 %v1764_v44  ;;  %v647_v8 = vcvt.f32.s32 %v1766_v50  ;;  %v739_v5 = vld [vmem:[%s2143_s1 + $0x98] sm:$0xff] }
 0x1cf   :  { %v547_v29 = vpop.xlane.xlu1 %546  ;;  %v533_v13 = vpop.xlane.xlu0 %532 }
 0x1d0   :  { %705 = vst.msk [vmem:[%s2145_s3 + $0x60] sm:$0xff] %vm692_vm2, %v523_v9  ;;  %vm834_vm14 = vcmp.eq.s32.totalorder %v523_v9, %v732_v53  ;;  %704 = vst.msk [vmem:[%s2145_s3 + $0x58] sm:$0xff] %vm692_vm2, %v509_v38  ;;  %vm833_vm15 = vcmp.eq.s32.totalorder %v509_v38, %v731_v61  ;;  %v548_v57 = vcvt.f32.s32 %v547_v29  ;;  %v534_v60 = vcvt.f32.s32 %v533_v13  ;;  %v741_v29 = vld [vmem:[%s2143_s1 + $0xa8] sm:$0xff] }
 0x1d1   :  { %v884_v63 = vsel %vm834_vm14, 1, %v1077_v58  ;;  %v883_v31 = vsel %vm833_vm15, 1, %v1077_v58  ;;  %v662_v41 = vshll.u32 %v661_v7, 16  ;;  %v648_v53 = vshll.u32 %v647_v8, 16 }
 0x1d2   :  { %909 = vst.msk [vmem:[%s2146_s4 + $0x60] sm:$0xff] %vm692_vm2, %v884_v63  ;;  %908 = vst.msk [vmem:[%s2146_s4 + $0x58] sm:$0xff] %vm692_vm2, %v883_v31  ;;  %v551_v2 = vadd.s32 %v550_v33, %v548_v57  ;;  %v537_v10 = vadd.s32 %v536_v59, %v534_v60  ;;  %v689_v61 = vcvt.f32.s32 %v1772_v35  ;;  %v675_v9 = vcvt.f32.s32 %v1774_v34 }
 0x1d3   :  { %v575_v39 = vpop.xlane.xlu1 %574  ;;  %v561_v23 = vpop.xlane.xlu0 %560 }
 0x1d4   :  { %707 = vst.msk [vmem:[%s2145_s3 + $0x70] sm:$0xff] %vm692_vm2, %v551_v2  ;;  %vm836_vm0 = vcmp.eq.s32.totalorder %v551_v2, %v734_v43  ;;  %706 = vst.msk [vmem:[%s2145_s3 + $0x68] sm:$0xff] %vm692_vm2, %v537_v10  ;;  %vm835_vm1 = vcmp.eq.s32.totalorder %v537_v10, %v733_v24  ;;  %v576_v40 = vcvt.f32.s32 %v575_v39  ;;  %v562_v46 = vcvt.f32.s32 %v561_v23 }
 0x1d5   :  { %v886_v27 = vsel %vm836_vm0, 1, %v1077_v58  ;;  %v885_v32 = vsel %vm835_vm1, 1, %v1077_v58  ;;  %v690_v60 = vshll.u32 %v689_v61, 16  ;;  %v676_v63 = vshll.u32 %v675_v9, 16 }
 0x1d6   :  { %911 = vst.msk [vmem:[%s2146_s4 + $0x70] sm:$0xff] %vm692_vm2, %v886_v27  ;;  %910 = vst.msk [vmem:[%s2146_s4 + $0x68] sm:$0xff] %vm692_vm2, %v885_v32  ;;  %v579_v26 = vadd.s32 %v578_v25, %v576_v40  ;;  %v565_v12 = vadd.s32 %v564_v11, %v562_v46  ;;  %v744_v11 = vld [vmem:[%s2143_s1 + $0xc0] sm:$0xff] }
 0x1d7   :  { %v603_v47 = vpop.xlane.xlu1 %602  ;;  %v589_v51 = vpop.xlane.xlu0 %588 }
 0x1d8   :  { %709 = vst.msk [vmem:[%s2145_s3 + $0x80] sm:$0xff] %vm692_vm2, %v579_v26  ;;  %vm838_vm3 = vcmp.eq.s32.totalorder %v579_v26, %v736_v15  ;;  %708 = vst.msk [vmem:[%s2145_s3 + $0x78] sm:$0xff] %vm692_vm2, %v565_v12  ;;  %vm837_vm4 = vcmp.eq.s32.totalorder %v565_v12, %v735_v0  ;;  %v604_v17 = vcvt.f32.s32 %v603_v47  ;;  %v590_v16 = vcvt.f32.s32 %v589_v51 }
 0x1d9   :  { %v888_v20 = vsel %vm838_vm3, 1, %v1077_v58  ;;  %v887_v52 = vsel %vm837_vm4, 1, %v1077_v58 }
 0x1da   :  { %913 = vst.msk [vmem:[%s2146_s4 + $0x80] sm:$0xff] %vm692_vm2, %v888_v20  ;;  %912 = vst.msk [vmem:[%s2146_s4 + $0x78] sm:$0xff] %vm692_vm2, %v887_v52  ;;  %v607_v49 = vadd.s32 %v606_v54, %v604_v17  ;;  %v593_v4 = vadd.s32 %v592_v42, %v590_v16 }
 0x1db   :  { %v631_v22 = vpop.xlane.xlu1 %630  ;;  %v617_v28 = vpop.xlane.xlu0 %616 }
 0x1dc   :  { %711 = vst.msk [vmem:[%s2145_s3 + $0x90] sm:$0xff] %vm692_vm2, %v607_v49  ;;  %vm840_vm5 = vcmp.eq.s32.totalorder %v607_v49, %v738_v3  ;;  %710 = vst.msk [vmem:[%s2145_s3 + $0x88] sm:$0xff] %vm692_vm2, %v593_v4  ;;  %vm839_vm6 = vcmp.eq.s32.totalorder %v593_v4, %v737_v62  ;;  %v632_v45 = vcvt.f32.s32 %v631_v22  ;;  %v618_v37 = vcvt.f32.s32 %v617_v28 }
 0x1dd   :  { %v890_v44 = vsel %vm840_vm5, 1, %v1077_v58  ;;  %v889_v50 = vsel %vm839_vm6, 1, %v1077_v58 }
 0x1de   :  { %915 = vst.msk [vmem:[%s2146_s4 + $0x90] sm:$0xff] %vm692_vm2, %v890_v44  ;;  %914 = vst.msk [vmem:[%s2146_s4 + $0x88] sm:$0xff] %vm692_vm2, %v889_v50  ;;  %v635_v56 = vadd.s32 %v634_v19, %v632_v45  ;;  %v621_v14 = vadd.s32 %v620_v18, %v618_v37 }
 0x1df   :  { %v659_v38 = vpop.xlane.xlu1 %658  ;;  %v645_v33 = vpop.xlane.xlu0 %644 }
 0x1e0   :  { %713 = vst.msk [vmem:[%s2145_s3 + $0xa0] sm:$0xff] %vm692_vm2, %v635_v56  ;;  %vm842_vm7 = vcmp.eq.s32.totalorder %v635_v56, %v740_v21  ;;  %712 = vst.msk [vmem:[%s2145_s3 + $0x98] sm:$0xff] %vm692_vm2, %v621_v14  ;;  %vm841_vm8 = vcmp.eq.s32.totalorder %v621_v14, %v739_v5  ;;  %v660_v59 = vcvt.f32.s32 %v659_v38  ;;  %v646_v30 = vcvt.f32.s32 %v645_v33 }
 0x1e1   :  { %v892_v35 = vsel %vm842_vm7, 1, %v1077_v58  ;;  %v891_v34 = vsel %vm841_vm8, 1, %v1077_v58 }
 0x1e2   :  { %917 = vst.msk [vmem:[%s2146_s4 + $0xa0] sm:$0xff] %vm692_vm2, %v892_v35  ;;  %916 = vst.msk [vmem:[%s2146_s4 + $0x98] sm:$0xff] %vm692_vm2, %v891_v34  ;;  %v663_v13 = vadd.s32 %v662_v41, %v660_v59  ;;  %v649_v57 = vadd.s32 %v648_v53, %v646_v30 }
 0x1e3   :  { %v687_v31 = vpop.xlane.xlu1 %686  ;;  %v673_v43 = vpop.xlane.xlu0 %672 }
 0x1e4   :  { %715 = vst.msk [vmem:[%s2145_s3 + $0xb0] sm:$0xff] %vm692_vm2, %v663_v13  ;;  %vm844_vm9 = vcmp.eq.s32.totalorder %v663_v13, %v742_v36  ;;  %714 = vst.msk [vmem:[%s2145_s3 + $0xa8] sm:$0xff] %vm692_vm2, %v649_v57  ;;  %vm843_vm10 = vcmp.eq.s32.totalorder %v649_v57, %v741_v29  ;;  %v688_v24 = vcvt.f32.s32 %v687_v31  ;;  %v674_v2 = vcvt.f32.s32 %v673_v43 }
 0x1e5   :  { %v894_v10 = vsel %vm844_vm9, 1, %v1077_v58  ;;  %v893_v25 = vsel %vm843_vm10, 1, %v1077_v58 }
 0x1e6   :  { %919 = vst.msk [vmem:[%s2146_s4 + $0xb0] sm:$0xff] %vm692_vm2, %v894_v10  ;;  %918 = vst.msk [vmem:[%s2146_s4 + $0xa8] sm:$0xff] %vm692_vm2, %v893_v25  ;;  %v691_v6 = vadd.s32 %v690_v60, %v688_v24  ;;  %v677_v39 = vadd.s32 %v676_v63, %v674_v2 }
 0x1e8   :  { %717 = vst.msk [vmem:[%s2145_s3 + $0xc0] sm:$0xff] %vm692_vm2, %v691_v6  ;;  %vm846_vm11 = vcmp.eq.s32.totalorder %v691_v6, %v744_v11  ;;  %716 = vst.msk [vmem:[%s2145_s3 + $0xb8] sm:$0xff] %vm692_vm2, %v677_v39  ;;  %vm845_vm12 = vcmp.eq.s32.totalorder %v677_v39, %v743_v1 }
 0x1e9   :  { %v896_v23 = vsel %vm846_vm11, 1, %v1077_v58  ;;  %v895_v40 = vsel %vm845_vm12, 1, %v1077_v58 }
 0x1ea   :  { %921 = vst.msk [vmem:[%s2146_s4 + $0xc0] sm:$0xff] %vm692_vm2, %v896_v23  ;;  %920 = vst.msk [vmem:[%s2146_s4 + $0xb8] sm:$0xff] %vm692_vm2, %v895_v40 }
 0x1eb   :  { %1072 = dma.done.wait [#allocation3], 3200  }
 0x1ec   :  { %1073 = vsyncadd [#allocation3], 4294964096 }
 0x1ed   :  { %945 = vsyncpa [#allocation3], 1 }

</bundles_post_ra>
